<compile_context>
chip_gen: v5e
topology: v5e:2x2
jax: 0.10.0
libtpu: 0.0.40
codegen_flags: <defaults>
</compile_context>

<pallas_src>
import functools

import jax
import jax.numpy as jnp
from jax.experimental import pallas as pl
from jax.experimental.pallas import tpu as pltpu


def _round_up(x, m):
    return ((x + m - 1) // m) * m


def _choose_spatial_tile(hw, max_tile=512):
    """Largest power-of-two divisor of hw that is <= max_tile, else hw."""
    t = max_tile
    while t >= 8:
        if hw % t == 0:
            return t
        t //= 2
    return hw


def _vmem_bytes(tile_s, c_in, c_feat_p, e_p):
    """Rough double-buffered VMEM working-set estimate for the kernel."""
    x_buf = 2 * tile_s * c_in * 2            # bf16 input tile, 2 buffers
    wc = 2 * c_in * c_feat_p * 2             # bf16 folded conv weight
    shift = 2 * c_feat_p * 4                 # f32 folded BN shift
    we = 2 * c_feat_p * e_p * 4              # f32 embed weight
    be = 2 * e_p * 4                         # f32 embed bias
    out = 2 * e_p * 4                        # f32 output tile
    acc = c_feat_p * 4                       # f32 accumulator scratch
    y = tile_s * c_feat_p * 4                # f32 intermediate activation
    return x_buf + wc + shift + we + be + out + acc + y


# -----------------------------------------------------------------------------
# Fused kernel:
#   x:      (1, TILE_S, C_in)      bf16  (one batch element, one spatial tile)
#   wc:     (C_in, C_feat_p)       bf16  (conv weight with BN scale folded in)
#   shift:  (1, C_feat_p)          f32   (folded BN shift)
#   we:     (C_feat_p, E_p)        f32   (embed weight)
#   be:     (1, E_p)               f32   (embed bias)
#   out:    (1, 1, E_p)            f32
#   acc:    (1, C_feat_p)          f32   VMEM scratch (spatial-sum accumulator)
# -----------------------------------------------------------------------------
def _fused_encoder_kernel(x_ref, wc_ref, shift_ref, we_ref, be_ref,
                          o_ref, acc_ref, *, inv_hw):
    s = pl.program_id(1)

    @pl.when(s == 0)
    def _():
        acc_ref[...] = jnp.zeros_like(acc_ref)

    # (TILE_S, C_in) bf16 @ (C_in, C_feat) bf16 -> f32 on the MXU
    y = jnp.dot(x_ref[0], wc_ref[...], preferred_element_type=jnp.float32)
    # folded-BN shift + ReLU in f32 on the VPU
    y = jnp.maximum(y + shift_ref[...], 0.0)
    # partial spatial sum for the global average pool (cross-sublane -> XLU;
    # XLU is otherwise idle here, MXU/VPU stay free)
    acc_ref[...] += jnp.sum(y, axis=0, keepdims=True)

    @pl.when(s == pl.num_programs(1) - 1)
    def _():
        pooled = acc_ref[...] * inv_hw                       # (1, C_feat) f32
        o_ref[0] = (
            jnp.dot(pooled, we_ref[...], preferred_element_type=jnp.float32)
            + be_ref[...]
        )


def encoder_cnn_forward(images, params, *, spatial_tile=None):
    """images: (B, C_in, H, W) float32 (NCHW, PyTorch convention)."""
    w_conv, bn_scale, bn_shift, w_embed, b_embed = params
    B, C_in, H, W = images.shape
    C_feat = w_conv.shape[1]
    E = w_embed.shape[1]
    HW = H * W

    # Pad feature / embed channel counts to lane-dense multiples of 128.
    C_feat_p = _round_up(C_feat, 128)
    E_p = _round_up(E, 128)

    # Fold BN scale into the conv weight (kernel epilogue only adds `shift`);
    # bf16 into the MXU, f32 everywhere else.
    w_fused = jnp.pad(w_conv * bn_scale,
                      ((0, 0), (0, C_feat_p - C_feat))).astype(jnp.bfloat16)
    shift = jnp.pad(bn_shift, ((0, 0), (0, C_feat_p - C_feat)))
    w_emb = jnp.pad(w_embed, ((0, C_feat_p - C_feat), (0, E_p - E)))
    b_emb = jnp.pad(b_embed, ((0, 0), (0, E_p - E)))

    # NCHW -> NHWC -> (B, H*W, C_in), channels on the lane axis.
    x = jnp.transpose(images, (0, 2, 3, 1)).reshape(B, HW, C_in)
    x = x.astype(jnp.bfloat16)

    tile_s = spatial_tile or _choose_spatial_tile(HW)
    assert HW % tile_s == 0, "spatial extent must be divisible by the tile"
    n_s = HW // tile_s

    needed = _vmem_bytes(tile_s, C_in, C_feat_p, E_p)
    vmem_limit = min(max(int(1.5 * needed) + (4 << 20), 32 << 20), 48 << 20)

    kernel = functools.partial(_fused_encoder_kernel, inv_hw=1.0 / HW)

    out = pl.pallas_call(
        kernel,
        out_shape=jax.ShapeDtypeStruct((B, 1, E_p), jnp.float32),
        grid=(B, n_s),
        in_specs=[
            pl.BlockSpec((1, tile_s, C_in), lambda b, s: (b, s, 0)),
            pl.BlockSpec((C_in, C_feat_p), lambda b, s: (0, 0)),
            pl.BlockSpec((1, C_feat_p), lambda b, s: (0, 0)),
            pl.BlockSpec((C_feat_p, E_p), lambda b, s: (0, 0)),
            pl.BlockSpec((1, E_p), lambda b, s: (0, 0)),
        ],
        out_specs=pl.BlockSpec((1, 1, E_p), lambda b, s: (b, 0, 0)),
        scratch_shapes=[pltpu.VMEM((1, C_feat_p), jnp.float32)],
        compiler_params=pltpu.CompilerParams(
            dimension_semantics=("parallel", "arbitrary"),
            vmem_limit_bytes=vmem_limit,
        ),
    )(x, w_fused, shift, w_emb, b_emb)

    return out.reshape(B, E_p)[:, :E]


def init_params(key, c_in, c_feat, embed_size):
    k1, k2, k3, k4, k5 = jax.random.split(key, 5)
    w_conv = jax.random.normal(k1, (c_in, c_feat), jnp.float32) * 0.1
    bn_scale = 1.0 + 0.05 * jax.random.normal(k2, (1, c_feat), jnp.float32)
    bn_shift = 0.05 * jax.random.normal(k3, (1, c_feat), jnp.float32)
    w_embed = jax.random.normal(k4, (c_feat, embed_size), jnp.float32) * 0.1
    b_embed = 0.01 * jax.random.normal(k5, (1, embed_size), jnp.float32)
    return (w_conv, bn_scale, bn_shift, w_embed, b_embed)


if __name__ == "__main__":
    # Small shapes consistent with the module's forward:
    #   images (B, C_in, H, W); C_feat stands in for resnet.fc.in_features
    #   (=2048 in real resnet50); embed_size is the Linear output dim.
    B, C_IN, H, W = 2, 4, 16, 16
    C_FEAT = 32
    EMBED_SIZE = 8

    key = jax.random.PRNGKey(0)
    k_img, k_par = jax.random.split(key)
    images = jax.random.normal(k_img, (B, C_IN, H, W), jnp.float32)
    params = init_params(k_par, C_IN, C_FEAT, EMBED_SIZE)

    out = encoder_cnn_forward(images, params)
    out = jax.block_until_ready(out)

    # Pure-JAX reference of the same synthetic forward (same bf16-rounded MXU
    # inputs, f32 math elsewhere).
    w_conv, bn_scale, bn_shift, w_embed, b_embed = params
    x_bf = (jnp.transpose(images, (0, 2, 3, 1))
            .reshape(B, H * W, C_IN)
            .astype(jnp.bfloat16).astype(jnp.float32))
    w_fused_bf = (w_conv * bn_scale).astype(jnp.bfloat16).astype(jnp.float32)
    y = jnp.maximum(jnp.einsum("bsc,cf->bsf", x_bf, w_fused_bf) + bn_shift, 0.0)
    pooled = y.mean(axis=1)
    ref = pooled @ w_embed + b_embed

    assert out.shape == (B, EMBED_SIZE)
    assert jnp.allclose(out, ref, atol=1e-3, rtol=1e-2), (
        jnp.max(jnp.abs(out - ref)))

    print("KERNEL_OK")
</pallas_src>

<mosaic_0001>
module attributes {stable_mosaic.version = 11 : i64} {
  func.func @_fused_encoder_kernel(%arg0: i32, %arg1: i32, %arg2: memref<1x256x4xbf16, #tpu.memory_space<vmem>>, %arg3: memref<4x128xbf16, #tpu.memory_space<vmem>>, %arg4: memref<1x128xf32, #tpu.memory_space<vmem>>, %arg5: memref<128x128xf32, #tpu.memory_space<vmem>>, %arg6: memref<1x128xf32, #tpu.memory_space<vmem>>, %arg7: memref<1x1x128xf32, #tpu.memory_space<vmem>>, %arg8: memref<1x128xf32, #tpu.memory_space<vmem>>) attributes {dimension_semantics = [#tpu.dimension_semantics<parallel>, #tpu.dimension_semantics<arbitrary>], iteration_bounds = array<i64: 2, 1>, scalar_prefetch = 0 : i64, scratch_operands = 1 : i64, tpu.core_type = #tpu.core_type<tc>, window_params = [{transform_indices = @transform_0, window_bounds = array<i64: 1, 256, 4>}, {pipeline_mode = #tpu.pipeline_mode<synchronous>, transform_indices = @transform_1, window_bounds = array<i64: 4, 128>}, {pipeline_mode = #tpu.pipeline_mode<synchronous>, transform_indices = @transform_2, window_bounds = array<i64: 1, 128>}, {pipeline_mode = #tpu.pipeline_mode<synchronous>, transform_indices = @transform_3, window_bounds = array<i64: 128, 128>}, {pipeline_mode = #tpu.pipeline_mode<synchronous>, transform_indices = @transform_4, window_bounds = array<i64: 1, 128>}, {transform_indices = @transform_5, window_bounds = array<i64: 1, 1, 128>}]} {
    %c0_i32 = arith.constant 0 : i32
    %0 = arith.cmpi eq, %arg1, %c0_i32 : i32
    %1 = arith.extui %0 : i1 to i32
    %c0_i32_0 = arith.constant 0 : i32
    %2 = arith.cmpi ne, %1, %c0_i32_0 : i32
    scf.if %2 {
      %cst_15 = arith.constant 0.000000e+00 : f32
      %20 = vector.broadcast %cst_15 : f32 to vector<1x128xf32>
      %c0_16 = arith.constant 0 : index
      %c0_17 = arith.constant 0 : index
      %21 = vector.load %arg8[%c0_16, %c0_17] : memref<1x128xf32, #tpu.memory_space<vmem>>, vector<1x128xf32>
      tpu.vector_store %arg8[%c0_16, %c0_17], %20 {strides = array<i32>} : memref<1x128xf32, #tpu.memory_space<vmem>>, vector<1x128xf32>,
    } else {
    }
    %c0 = arith.constant 0 : index
    %c0_1 = arith.constant 0 : index
    %c0_2 = arith.constant 0 : index
    %3 = vector.load %arg2[%c0, %c0_1, %c0_2] : memref<1x256x4xbf16, #tpu.memory_space<vmem>>, vector<1x256x4xbf16>
    %4 = vector.shape_cast %3 : vector<1x256x4xbf16> to vector<256x4xbf16>
    %c0_3 = arith.constant 0 : index
    %c0_4 = arith.constant 0 : index
    %5 = vector.load %arg3[%c0_3, %c0_4] : memref<4x128xbf16, #tpu.memory_space<vmem>>, vector<4x128xbf16>
    %cst = arith.constant dense<0.000000e+00> : vector<256x128xf32>
    %6 = tpu.matmul %4, %5, %cst {dimension_numbers = #tpu.dot_dimension_numbers<[1], [0], [0], [1], [0, 0, 1, 1], [], []>} : vector<256x4xbf16>, vector<4x128xbf16>, vector<256x128xf32> -> vector<256x128xf32>
    %c0_5 = arith.constant 0 : index
    %c0_6 = arith.constant 0 : index
    %7 = vector.load %arg4[%c0_5, %c0_6] : memref<1x128xf32, #tpu.memory_space<vmem>>, vector<1x128xf32>
    %8 = vector.broadcast %7 : vector<1x128xf32> to vector<256x128xf32>
    %9 = arith.addf %6, %8 : vector<256x128xf32>
    %cst_7 = arith.constant 0.000000e+00 : f32
    %10 = vector.broadcast %cst_7 : f32 to vector<256x128xf32>
    %11 = arith.maximumf %9, %10 : vector<256x128xf32>
    %c0_8 = arith.constant 0 : index
    %c0_9 = arith.constant 0 : index
    %12 = vector.load %arg8[%c0_8, %c0_9] : memref<1x128xf32, #tpu.memory_space<vmem>>, vector<1x128xf32>
    %cst_10 = arith.constant dense<0.000000e+00> : vector<128xf32>
    %13 = vector.multi_reduction <add>, %11, %cst_10 [0] : vector<256x128xf32> to vector<128xf32>
    %14 = vector.shape_cast %13 : vector<128xf32> to vector<1x128xf32>
    %15 = arith.addf %12, %14 : vector<1x128xf32>
    %c0_11 = arith.constant 0 : index
    %c0_12 = arith.constant 0 : index
    %16 = vector.load %arg8[%c0_11, %c0_12] : memref<1x128xf32, #tpu.memory_space<vmem>>, vector<1x128xf32>
    tpu.vector_store %arg8[%c0_11, %c0_12], %15 {strides = array<i32>} : memref<1x128xf32, #tpu.memory_space<vmem>>, vector<1x128xf32>,
    %c0_i32_13 = arith.constant 0 : i32
    %17 = arith.cmpi eq, %arg1, %c0_i32_13 : i32
    %18 = arith.extui %17 : i1 to i32
    %c0_i32_14 = arith.constant 0 : i32
    %19 = arith.cmpi ne, %18, %c0_i32_14 : i32
    scf.if %19 {
      %c0_15 = arith.constant 0 : index
      %c0_16 = arith.constant 0 : index
      %20 = vector.load %arg8[%c0_15, %c0_16] : memref<1x128xf32, #tpu.memory_space<vmem>>, vector<1x128xf32>
      %cst_17 = arith.constant 3.906250e-03 : f32
      %21 = vector.broadcast %cst_17 : f32 to vector<1x128xf32>
      %22 = arith.mulf %20, %21 : vector<1x128xf32>
      %c0_18 = arith.constant 0 : index
      %c0_19 = arith.constant 0 : index
      %23 = vector.load %arg5[%c0_18, %c0_19] : memref<128x128xf32, #tpu.memory_space<vmem>>, vector<128x128xf32>
      %cst_20 = arith.constant dense<0.000000e+00> : vector<1x128xf32>
      %24 = tpu.matmul %22, %23, %cst_20 {dimension_numbers = #tpu.dot_dimension_numbers<[1], [0], [0], [1], [0, 0, 1, 1], [], []>} : vector<1x128xf32>, vector<128x128xf32>, vector<1x128xf32> -> vector<1x128xf32>
      %c0_21 = arith.constant 0 : index
      %c0_22 = arith.constant 0 : index
      %25 = vector.load %arg6[%c0_21, %c0_22] : memref<1x128xf32, #tpu.memory_space<vmem>>, vector<1x128xf32>
      %26 = arith.addf %24, %25 : vector<1x128xf32>
      %c0_23 = arith.constant 0 : index
      %c0_24 = arith.constant 0 : index
      %c0_25 = arith.constant 0 : index
      %27 = vector.load %arg7[%c0_23, %c0_24, %c0_25] : memref<1x1x128xf32, #tpu.memory_space<vmem>>, vector<1x1x128xf32>
      %28 = vector.shape_cast %27 : vector<1x1x128xf32> to vector<1x128xf32>
      %29 = vector.shape_cast %26 : vector<1x128xf32> to vector<1x1x128xf32>
      tpu.vector_store %arg7[%c0_23, %c0_24, %c0_25], %29 {strides = array<i32>} : memref<1x1x128xf32, #tpu.memory_space<vmem>>, vector<1x1x128xf32>,
    } else {
    }
    return
  }
  func.func @transform_0(%arg0: i32, %arg1: i32) -> (i32, i32, i32) {
    %c0_i32 = arith.constant 0 : i32
    %c0_i32_0 = arith.constant 0 : i32
    return %arg0, %arg1, %c0_i32 : i32, i32, i32
  }
  func.func @transform_1(%arg0: i32, %arg1: i32) -> (i32, i32) {
    %c0_i32 = arith.constant 0 : i32
    %c0_i32_0 = arith.constant 0 : i32
    %c0_i32_1 = arith.constant 0 : i32
    return %c0_i32, %c0_i32_0 : i32, i32
  }
  func.func @transform_2(%arg0: i32, %arg1: i32) -> (i32, i32) {
    %c0_i32 = arith.constant 0 : i32
    %c0_i32_0 = arith.constant 0 : i32
    %c0_i32_1 = arith.constant 0 : i32
    return %c0_i32, %c0_i32_0 : i32, i32
  }
  func.func @transform_3(%arg0: i32, %arg1: i32) -> (i32, i32) {
    %c0_i32 = arith.constant 0 : i32
    %c0_i32_0 = arith.constant 0 : i32
    %c0_i32_1 = arith.constant 0 : i32
    return %c0_i32, %c0_i32_0 : i32, i32
  }
  func.func @transform_4(%arg0: i32, %arg1: i32) -> (i32, i32) {
    %c0_i32 = arith.constant 0 : i32
    %c0_i32_0 = arith.constant 0 : i32
    %c0_i32_1 = arith.constant 0 : i32
    return %c0_i32, %c0_i32_0 : i32, i32
  }
  func.func @transform_5(%arg0: i32, %arg1: i32) -> (i32, i32, i32) {
    %c0_i32 = arith.constant 0 : i32
    %c0_i32_0 = arith.constant 0 : i32
    %c0_i32_1 = arith.constant 0 : i32
    return %arg0, %c0_i32, %c0_i32_0 : i32, i32, i32
  }
}

</mosaic_0001>

<bundles_post_ra>
// kernel: tpu_custom_call.1
= control target key start
LH: loop header
LB: loop body
LE: loop exit
PB: predicated region body
PF: predicated region fallthrough
CT: control target
= control target key end

     0   :  { %10 = vsyncpa [#allocation4], 0  ;;  %s1241_s0 = inlined_call_operand.vmem [shape: bf16[2,256,4], index: 0, kind: input, shape index: {}]   ;;  %s1242_s1 = inlined_call_operand.vmem [shape: bf16[4,128], index: 1, kind: input, shape index: {}]   ;;  %s1243_s2 = inlined_call_operand.vmem [shape: f32[1,128], index: 2, kind: input, shape index: {}]   ;;  %s1244_s3 = inlined_call_operand.vmem [shape: f32[128,128], index: 3, kind: input, shape index: {}]   ;;  %s1245_s4 = inlined_call_operand.vmem [shape: f32[1,128], index: 4, kind: input, shape index: {}]   ;;  %s1246_s5 = inlined_call_operand.hbm [shape: f32[2,1,128], index: 5, kind: output, shape index: {}]  }
   0x1   :  { %12 = vsyncpa [#allocation4 + $0x1], 0  ;;  %s989_s18 = smov 0   ;;  %s991_s19 = smov 0  }
   0x2   :  { %s993_s20 = smov 0   ;;  %s995_s21 = smov 0  }
   0x3   :  { %s997_s22 = smov 0   ;;  %s999_s23 = smov 0  }
   0x4 LB: > { %s712_s24 = sadd.s32 4294967295, %s956_s23   ;;  %s713_s25 = sadd.s32 4294967294, %s956_s23   ;;  %s956_s23 = sphi %s999_s23, %s18_s23   ;;  %s952_s22 = sphi %s997_s22, %s1253_s22   ;;  %s948_s21 = sphi %s995_s21, %s1252_s21   ;;  %s944_s20 = sphi %s993_s20, %s1251_s20   ;;  %s940_s19 = sphi %s991_s19, %s1250_s19   ;;  %s936_s18 = sphi %s989_s18, %s1249_s18  }
   0x5   : > { %s30_s26 = sadd.s32 1, %s952_s22  ;;  %s149_s27 = sadd.s32 1, %s944_s20 }
   0x6   : > { %p32_p0 = scmp.ge.s32.totalorder %s30_s26, 2  ;;  %p159_p1 = scmp.ne.s32.totalorder %s944_s20, %s940_s19 }
   0x7   : > { %p160_p2 = scmp.eq.s32.totalorder %s712_s24, 1  ;;  %p165_p3 = scmp.ne.s32.totalorder %s940_s19, %s936_s18 }
   0x8   : > { %s1255_s26 = smov (%p32_p0, %s30_s26), 0  ;;  %p166_p5 = scmp.eq.s32.totalorder %s713_s25, 1 }
   0x9   : > { %p1029_p4 = por %p160_p2, %p159_p1  ;;  %s146_s29 = ssub.s32 %s952_s22, %s1255_s26 }
   0xa   : > { %p716_p6 = scmp.ge.s32.totalorder %s956_s23, 1  ;;  %p147_p7 = scmp.eq.s32.totalorder %s146_s29, 0 }
   0xb   : > { %p1036_p8 = por %p166_p5, %p165_p3  ;;  %p209_p9 = scmp.lt.s32.totalorder %s956_s23, 3 }
   0xc   : > { %s1042_s6 = scalar_select %p147_p7, %s944_s20, %s149_s27  }
   0xd   : > { %p210_p10 = pnand %p716_p6, %p209_p9 }
   0xe   : > { %p241_p11 = scmp.lt.s32.totalorder (!%p210_p10), %s948_s21, 1  ;;  %s238_s24 = sand.u32 (!%p210_p10), 1, %s940_s19  }
   0xf   : > { %213 = sbr.rel (%p210_p10) target bundleno = 428 (0x1ac), region = 40  ;;  %s639_s29 = scalar_lea.hbm (!%p210_p10), %s1246_s5, %s948_s21 }
  0x10   : > { %s643_s11 = sshll.u32 (!%p210_p10), %s639_s29, 4  ;;  %s631_s12 = scalar_lea.sflag (!%p210_p10), [#allocation4], %s238_s24  ;;  %s644_s11 = int_to_ptr.hbm [resolvable:$true] %s643_s11 }
  0x11   : > { %s898_s16 = scalar_lea.hbm (!%p210_p10), %s1246_s5, 2 }
  0x14   : > { %v288_v0 = vld [vmem:[%s1242_s1] sm:$0x3]  ;;  %vm422_vm0 = vcmask 1041408   ;;  %s242_s9 = scalar_select %p241_p11, %s948_s21, 1  ;;  %vm373_vm1 = vcmask 31744  }
  0x15   : > { %v424_v1 = vsel %vm422_vm0, %v288_v0, 0  ;;  %v1099_v32 = vld [vmem:[%s1243_s2] ss:$0 sm:$0xff] }
  0x16   : > { %433 = vmatpush.bf16.msra.mxu0 %v424_v1  ;;  %819 = vmatpush.bf16.msra.mxu2 %v424_v1  ;;  %s801_s10 = sshll.u32 %s242_s9, 7  ;;  %s239_s9 = scalar_lea.vmem [#allocation3], %s238_s24 }
  0x17   : > { %820 = vmatpush.bf16.msra.mxu3 %v424_v1  ;;  %818 = vmatpush.bf16.msra.mxu1 %v424_v1  ;;  %s1052_s13 = scalar_lea.vmem %s1241_s0, %s801_s10  ;;  %s641_s10 = sshll.u32 %s239_s9, 4  ;;  %s642_s10 = int_to_ptr.vmem [resolvable:$true] %s641_s10 }
  0x18   : > { %v802_v2 = vld [vmem:[%s1052_s13] sm:$0xff]  ;;  %v809_v3 = vld [vmem:[%s1052_s13 + $0x38] sm:$0xff]  ;;  %v803_v5 = vld [vmem:[%s1052_s13 + $0x8] sm:$0xff] }
  0x19   : > { %783 = vmatmul.msk.bf16.vlgmr.msra.gmra.mxu0 %vm373_vm1, %v802_v2  ;;  %790 = vmatmul.msk.bf16.vlgmr.msra.gmra.mxu2 %vm373_vm1, %v809_v3  ;;  %v814_v4 = vld [vmem:[%s1052_s13 + $0x60] sm:$0xff]  ;;  %v807_v7 = vld [vmem:[%s1052_s13 + $0x28] sm:$0xff]  ;;  %v804_v9 = vld [vmem:[%s1052_s13 + $0x10] sm:$0xff] }
  0x1a   : > { %795 = vmatmul.msk.bf16.vlgmr.msra.gmra.mxu3 %vm373_vm1, %v814_v4  ;;  %v810_v6 = vld [vmem:[%s1052_s13 + $0x40] sm:$0xff]  ;;  %v815_v8 = vld [vmem:[%s1052_s13 + $0x68] sm:$0xff]  ;;  %788 = vmatmul.msk.bf16.vlgmr.msra.gmra.mxu1 %vm373_vm1, %v807_v7  ;;  %v808_v11 = vld [vmem:[%s1052_s13 + $0x30] sm:$0xff] }
  0x1b   : > { %v811_v10 = vld [vmem:[%s1052_s13 + $0x48] sm:$0xff]  ;;  %v816_v12 = vld [vmem:[%s1052_s13 + $0x70] sm:$0xff]  ;;  %v805_v13 = vld [vmem:[%s1052_s13 + $0x18] sm:$0xff] }
  0x1c   : > { %v812_v14 = vld [vmem:[%s1052_s13 + $0x50] sm:$0xff]  ;;  %v817_v15 = vld [vmem:[%s1052_s13 + $0x78] sm:$0xff]  ;;  %v806_v16 = vld [vmem:[%s1052_s13 + $0x20] sm:$0xff] }
  0x1d   : > { %v813_v17 = vld [vmem:[%s1052_s13 + $0x58] sm:$0xff]  ;;  %s892_s13 = sshra.s32 %s644_s11, 4  ;;  %s893_s13 = int_to_ptr.hbm [resolvable:$true] %s892_s13 }
  0x1e   : > { %s894_s14 = scalar_lea.hbm %s893_s13, 1  ;;  %p899_p1 = scmp.lt.s32.totalorder %s893_s13, %s1246_s5 }
  0x1f   : > { %p895_p12 = scmp.ne.s32.totalorder %s893_s13, %s894_s14  ;;  %p900_p2 = scmp.lt.s32.totalorder %s898_s16, %s894_s14 }
  0x21   : > { %p896_p13 = pnand %p895_p12, %p1029_p4  ;;  %p901_p3 = por %p900_p2, %p899_p1 }
  0x23   : > { %p897_p0 = pneg %p896_p13 }
  0x25   : > { %p902_p5 = pnand %p901_p3, %p897_p0 }
  0x29   : > { %784 = vmatmul.msk.bf16.gmra.mxu0 %vm373_vm1, %v803_v5  ;;  %791 = vmatmul.msk.bf16.gmra.mxu2 %vm373_vm1, %v810_v6 }
  0x2a   : > { %796 = vmatmul.msk.bf16.gmra.mxu3 %vm373_vm1, %v815_v8  ;;  %789 = vmatmul.msk.bf16.gmra.mxu1 %vm373_vm1, %v808_v11 }
  0x39   : > { %785 = vmatmul.msk.bf16.gmra.mxu0 %vm373_vm1, %v804_v9  ;;  %792 = vmatmul.msk.bf16.gmra.mxu2 %vm373_vm1, %v811_v10 }
  0x3a   : > { %797 = vmatmul.msk.bf16.gmra.mxu3 %vm373_vm1, %v816_v12 }
  0x49   : > { %786 = vmatmul.msk.bf16.gmra.mxu0 %vm373_vm1, %v805_v13  ;;  %793 = vmatmul.msk.bf16.gmra.mxu2 %vm373_vm1, %v812_v14 }
  0x4a   : > { %798 = vmatmul.msk.bf16.gmra.mxu3 %vm373_vm1, %v817_v15 }
  0x59   : > { %787 = vmatmul.msk.bf16.gmra.mxu0 %vm373_vm1, %v806_v16  ;;  %794 = vmatmul.msk.bf16.gmra.mxu2 %vm373_vm1, %v813_v17 }
  0x96   : > { %v435_v18 = vpop.f32.mrf.mxu0 }
  0x97   : > { %v460_v29 = vpop.f32.mrf.mxu1  ;;  %v436_v35 = vadd.f32 %v1099_v32, %v435_v18 }
  0x98   : > { %v461_v3 = vadd.f32 %v1099_v32, %v460_v29  ;;  %v607_v29 = vld [vmem:[%s1244_s3 + $0x78] sm:$0xff] }
  0x99   : > { %v515_v42 = vmax.f32 %v436_v35, 0.0  ;;  %609 = vmatpush.msrb.mxu1 %v607_v29  ;;  %v592_v29 = vld [vmem:[%s1244_s3] sm:$0xff] }
  0x9a   : > { %v525_v11 = vmax.f32 %v461_v3, 0.0 }
  0x9c   : > { %v470_v19 = vpop.f32.mrf.mxu2 }
  0x9d   : > { %v1092_v28 = vpop.f32.mrf.mxu3  ;;  %v471_v17 = vadd.f32 %v1099_v32, %v470_v19  ;;  %v606_v19 = vld [vmem:[%s1244_s3 + $0x70] sm:$0xff] }
  0x9e   : > { %v437_v20 = vpop.f32.mrf.mxu0  ;;  %610 = vmatpush.msrb.mxu1 %v606_v19 }
  0x9f   : > { %v438_v34 = vadd.f32 %v1099_v32, %v437_v20  ;;  %v462_v37 = vpop.f32.mrf.mxu1 }
  0xa0   : > { %v463_v6 = vadd.f32 %v1099_v32, %v462_v37 }
  0xa1   : > { %v516_v40 = vmax.f32 %v438_v34, 0.0 }
  0xa2   : > { %v526_v14 = vmax.f32 %v463_v6, 0.0 }
  0xa3   : > { %v548_v45 = vadd.f32 %v516_v40, %v515_v42  ;;  %v605_v40 = vld [vmem:[%s1244_s3 + $0x68] sm:$0xff] }
  0xa4   : > { %v1086_v22 = vpop.f32.mrf.mxu2  ;;  %611 = vmatpush.msrb.mxu1 %v605_v40 }
  0xa5   : > { %v1101_v33 = vpop.f32.mrf.mxu3 }
  0xa6   : > { %v440_v21 = vpop.f32.mrf.mxu0 }
  0xa7   : > { %v441_v36 = vadd.f32 %v1099_v32, %v440_v21  ;;  %v465_v56 = vpop.f32.mrf.mxu1 }
  0xa8   : > { %v466_v12 = vadd.f32 %v1099_v32, %v465_v56 }
  0xa9   : > { %v517_v43 = vmax.f32 %v441_v36, 0.0 }
  0xaa   : > { %v527_v18 = vmax.f32 %v466_v12, 0.0 }
  0xab   : > { %v549_v49 = vadd.f32 %v548_v45, %v517_v43 }
  0xac   : > { %v1088_v24 = vpop.f32.mrf.mxu2 }
  0xad   : > { %v1111_v48 = vpop.f32.mrf.mxu3  ;;  %v476_v34 = vadd.f32 %v1099_v32, %v1088_v24 }
  0xae   : > { %v442_v23 = vpop.f32.mrf.mxu0 }
  0xaf   : > { %v443_v41 = vadd.f32 %v1099_v32, %v442_v23  ;;  %v467_v9 = vpop.f32.mrf.mxu1  ;;  %v473_v23 = vadd.f32 %v1099_v32, %v1086_v22  ;;  %v531_v24 = vmax.f32 %v476_v34, 0.0 }
  0xb0   : > { %v468_v16 = vadd.f32 %v1099_v32, %v467_v9 }
  0xb1   : > { %v518_v46 = vmax.f32 %v443_v41, 0.0  ;;  %v530_v37 = vmax.f32 %v473_v23, 0.0  ;;  %v958_v41 = vmov 0.0   ;;  %v593_v23 = vld [vmem:[%s1244_s3 + $0x8] sm:$0xff] }
  0xb2   : > { %255 = vst [vmem:[#allocation2] sm:$0x1] %v958_v41 }
  0xb3   : > { %v550_v53 = vadd.f32 %v549_v49, %v518_v46 }
  0xb4   : > { %v1090_v26 = vpop.f32.mrf.mxu2 }
  0xb5   : > { %v1116_v2 = vpop.f32.mrf.mxu3  ;;  %v478_v22 = vadd.f32 %v1099_v32, %v1090_v26 }
  0xb6   : > { %v445_v25 = vpop.f32.mrf.mxu0 }
  0xb7   : > { %v446_v44 = vadd.f32 %v1099_v32, %v445_v25  ;;  %v528_v25 = vmax.f32 %v468_v16, 0.0  ;;  %v532_v45 = vmax.f32 %v478_v22, 0.0 }
  0xb9   : > { %v519_v50 = vmax.f32 %v446_v44, 0.0  ;;  %v604_v44 = vld [vmem:[%s1244_s3 + $0x60] sm:$0xff] }
  0xba   : > { %612 = vmatpush.msrb.mxu1 %v604_v44 }
  0xbb   : > { %v551_v58 = vadd.f32 %v550_v53, %v519_v50 }
  0xbc   : > { %v1094_v30 = vpop.f32.mrf.mxu2 }
  0xbd   : > { %v1124_v21 = vpop.f32.mrf.mxu3  ;;  %v481_v42 = vadd.f32 %v1099_v32, %v1094_v30 }
  0xbe   : > { %v447_v27 = vpop.f32.mrf.mxu0 }
  0xbf   : > { %v448_v47 = vadd.f32 %v1099_v32, %v447_v27  ;;  %v533_v50 = vmax.f32 %v481_v42, 0.0 }
  0xc1   : > { %v520_v54 = vmax.f32 %v448_v47, 0.0  ;;  %v603_v47 = vld [vmem:[%s1244_s3 + $0x58] sm:$0xff] }
  0xc2   : > { %613 = vmatpush.msrb.mxu1 %v603_v47 }
  0xc3   : > { %v552_v61 = vadd.f32 %v551_v58, %v520_v54 }
  0xc4   : > { %v1106_v39 = vpop.f32.mrf.mxu2 }
  0xc5   : > { %v483_v26 = vadd.f32 %v1099_v32, %v1106_v39  ;;  %v507_v49 = vpop.f32.mrf.mxu3 }
  0xc6   : > { %v450_v31 = vpop.f32.mrf.mxu0 }
  0xc7   : > { %v451_v51 = vadd.f32 %v1099_v32, %v450_v31  ;;  %v529_v31 = vmax.f32 %v471_v17, 0.0  ;;  %v534_v53 = vmax.f32 %v483_v26, 0.0  ;;  %v594_v17 = vld [vmem:[%s1244_s3 + $0x10] sm:$0xff] }
  0xc9   : > { %v521_v59 = vmax.f32 %v451_v51, 0.0 }
  0xcb   : > { %v553_v63 = vadd.f32 %v552_v61, %v521_v59 }
  0xcc   : > { %v485_v57 = vpop.f32.mrf.mxu2 }
  0xcd   : > { %v486_v30 = vadd.f32 %v1099_v32, %v485_v57  ;;  %v510_v6 = vpop.f32.mrf.mxu3 }
  0xce   : > { %v452_v38 = vpop.f32.mrf.mxu0 }
  0xcf   : > { %v453_v55 = vadd.f32 %v1099_v32, %v452_v38  ;;  %v535_v58 = vmax.f32 %v486_v30, 0.0 }
  0xd1   : > { %v522_v62 = vmax.f32 %v453_v55, 0.0  ;;  %v601_v55 = vld [vmem:[%s1244_s3 + $0x48] sm:$0xff] }
  0xd3   : > { %v554_v4 = vadd.f32 %v553_v63, %v522_v62 }
  0xd4   : > { %v487_v10 = vpop.f32.mrf.mxu2 }
  0xd5   : > { %v488_v54 = vadd.f32 %v1099_v32, %v487_v10  ;;  %v597_v10 = vld [vmem:[%s1244_s3 + $0x28] sm:$0xff] }
  0xd6   : > { %v455_v52 = vpop.f32.mrf.mxu0 }
  0xd7   : > { %v456_v60 = vadd.f32 %v1099_v32, %v455_v52  ;;  %v602_v52 = vld [vmem:[%s1244_s3 + $0x50] sm:$0xff]  ;;  %v536_v61 = vmax.f32 %v488_v54, 0.0 }
  0xd8   : > { %614 = vmatpush.msrb.mxu1 %v602_v52 }
  0xd9   : > { %v523_v0 = vmax.f32 %v456_v60, 0.0  ;;  %v600_v60 = vld [vmem:[%s1244_s3 + $0x40] sm:$0xff] }
  0xda   : > { %615 = vmatpush.msrb.mxu1 %v601_v55 }
  0xdb   : > { %v555_v7 = vadd.f32 %v554_v4, %v523_v0  ;;  %v599_v0 = vld [vmem:[%s1244_s3 + $0x38] sm:$0xff] }
  0xdc   : > { %v490_v36 = vpop.f32.mrf.mxu2  ;;  %616 = vmatpush.msrb.mxu1 %v600_v60 }
  0xdd   : > { %v491_v57 = vadd.f32 %v1099_v32, %v490_v36 }
  0xde   : > { %v457_v1 = vpop.f32.mrf.mxu0  ;;  %617 = vmatpush.msrb.mxu1 %v599_v0 }
  0xdf   : > { %v458_v5 = vadd.f32 %v1099_v32, %v457_v1  ;;  %v496_v1 = vadd.f32 %v1099_v32, %v1092_v28  ;;  %v537_v4 = vmax.f32 %v491_v57, 0.0  ;;  %v501_v28 = vadd.f32 %v1099_v32, %v1111_v48 }
  0xe1   : > { %v524_v8 = vmax.f32 %v458_v5, 0.0  ;;  %v598_v5 = vld [vmem:[%s1244_s3 + $0x30] sm:$0xff]  ;;  %v541_v48 = vmax.f32 %v501_v28, 0.0 }
  0xe2   : > { %618 = vmatpush.msrb.mxu1 %v598_v5 }
  0xe3   : > { %v556_v13 = vadd.f32 %v555_v7, %v524_v8  ;;  %v498_v7 = vadd.f32 %v1099_v32, %v1101_v33  ;;  %v595_v33 = vld [vmem:[%s1244_s3 + $0x18] sm:$0xff] }
  0xe4   : > { %v492_v56 = vpop.f32.mrf.mxu2  ;;  %619 = vmatpush.msrb.mxu1 %v597_v10 }
  0xe5   : > { %v557_v15 = vadd.f32 %v556_v13, %v525_v11  ;;  %v493_v63 = vadd.f32 %v1099_v32, %v492_v56  ;;  %v539_v11 = vmax.f32 %v496_v1, 0.0  ;;  %v596_v13 = vld [vmem:[%s1244_s3 + $0x20] sm:$0xff] }
  0xe6   : > { %620 = vmatpush.msrb.mxu1 %v596_v13 }
  0xe7   : > { %v558_v20 = vadd.f32 %v557_v15, %v526_v14  ;;  %v538_v9 = vmax.f32 %v493_v63, 0.0  ;;  %v540_v14 = vmax.f32 %v498_v7, 0.0  ;;  %v503_v15 = vadd.f32 %v1099_v32, %v1116_v2 }
  0xe8   : > { %621 = vmatpush.msrb.mxu1 %v595_v33 }
  0xe9   : > { %v559_v27 = vadd.f32 %v558_v20, %v527_v18  ;;  %v506_v18 = vadd.f32 %v1099_v32, %v1124_v21  ;;  %v511_v21 = vadd.f32 %v1099_v32, %v510_v6 }
  0xea   : > { %622 = vmatpush.msrb.mxu1 %v594_v17 }
  0xeb   : > { %v560_v35 = vadd.f32 %v559_v27, %v528_v25  ;;  %v542_v25 = vmax.f32 %v503_v15, 0.0  ;;  %v508_v27 = vadd.f32 %v1099_v32, %v507_v49  ;;  %v543_v34 = vmax.f32 %v506_v18, 0.0 }
  0xec   : > { %623 = vmatpush.msrb.mxu1 %v593_v23 }
  0xed   : > { %v561_v38 = vadd.f32 %v560_v35, %v529_v31  ;;  %v512_v31 = vpop.f32.mrf.mxu3  ;;  %v544_v19 = vmax.f32 %v508_v27, 0.0 }
  0xee   : > { %624 = vmatpush.msrb.mxu1 %v592_v29 }
  0xef   : > { %v562_v43 = vadd.f32 %v561_v38, %v530_v37  ;;  %v513_v37 = vadd.f32 %v1099_v32, %v512_v31  ;;  %v545_v38 = vmax.f32 %v511_v21, 0.0  ;;  %v608_v32 = vld [vmem:[%s1245_s4] sm:$0x1] }
  0xf1   : > { %v563_v46 = vadd.f32 %v562_v43, %v531_v24  ;;  %v546_v41 = vmax.f32 %v513_v37, 0.0 }
  0xf3   : > { %v564_v51 = vadd.f32 %v563_v46, %v532_v45  ;;  %v547_v46 = vld [vmem:[#allocation2] sm:$0x1] }
  0xf5   : > { %v565_v39 = vadd.f32 %v564_v51, %v533_v50 }
  0xf7   : > { %v566_v59 = vadd.f32 %v565_v39, %v534_v53 }
  0xf9   : > { %v567_v62 = vadd.f32 %v566_v59, %v535_v58 }
  0xfb   : > { %v568_v3 = vadd.f32 %v567_v62, %v536_v61 }
  0xfd   : > { %v569_v8 = vadd.f32 %v568_v3, %v537_v4 }
  0xff   : > { %v570_v12 = vadd.f32 %v569_v8, %v538_v9 }
 0x101   : > { %v571_v16 = vadd.f32 %v570_v12, %v539_v11 }
 0x103   : > { %v572_v20 = vadd.f32 %v571_v16, %v540_v14 }
 0x105   : > { %v573_v2 = vadd.f32 %v572_v20, %v541_v48 }
 0x107   : > { %v574_v35 = vadd.f32 %v573_v2, %v542_v25 }
 0x109   : > { %v575_v36 = vadd.f32 %v574_v35, %v543_v34 }
 0x10b   : > { %v576_v22 = vadd.f32 %v575_v36, %v544_v19 }
 0x10d   : > { %v577_v40 = vadd.f32 %v576_v22, %v545_v38 }
 0x10f   : > { %v578_v24 = vadd.f32 %v577_v40, %v546_v41 }
 0x111   : > { %v579_v42 = vrot.slane %v578_v24, 4 }
 0x113   : > { %v580_v43 = vadd.f32 %v579_v42, %v578_v24 }
 0x115   : > { %v581_v44 = vrot.slane %v580_v43, 2 }
 0x117   : > { %v582_v45 = vadd.f32 %v581_v44, %v580_v43 }
 0x119   : > { %v583_v26 = vrot.slane %v582_v45, 1 }
 0x11b   : > { %v584_v47 = vadd.f32 %v583_v26, %v582_v45 }
 0x11d   : > { %v585_v49 = vadd.f32 %v584_v47, %v547_v46 }
 0x11f   : > { %586 = vst [vmem:[#allocation2] sm:$0x1] %v585_v49 }
 0x126   : > { %v590_v50 = vld [vmem:[#allocation2] sm:$0x1] }
 0x127   : > { %v591_v30 = vmul.f32 0.00390625, %v590_v50 }
 0x129   : > { %625 = vmatmul.f32.vlgmr.msrb.gmra.mxu1 %v591_v30 }
 0x1a6   : > { %v626_v51 = vpop.f32.mrf.mxu1 }
 0x1a7   : > { %v627_v52 = vadd.f32 %v626_v51, %v608_v32 }
 0x1a9   : > { %629 = vst [vmem:[%s239_s9] sm:$0x1] %v627_v52 }
 0x1aa   : > { %905 = shalt.err (!%p902_p5)
}
 0x1ab   : > { %821 = dma.vmem_to_hbm [thread:$0]  (%p1029_p4), %s642_s10, 16, %s644_s11, %s631_s12  }
 0x1ac PF: > { %p827_p6 = scmp.ge.s32.totalorder %s956_s23, 2  ;;  %s655_s24 = sand.u32 1, %s936_s18  }
 0x1ad   : > { %s656_s27 = scalar_lea.sflag [#allocation4], %s655_s24 }
 0x1ae   : > { %p824_p7 = pnand %p827_p6, %p1036_p8 }
 0x1b0   : > { %p825_p9 = pneg %p824_p7 }
 0x1b2   : > { %931 = dma.done.wait (%p825_p9), %s656_s27, 16  }
 0x1b3   : > { %933 = vsyncadd (%p825_p9), %s656_s27, 4294967280  ;;  %s18_s23 = sadd.s32 1, %s956_s23   ;;  %s1249_s18 = smov %s940_s19 }
 0x1b4   : > { %p15_p10 = scmp.ge.s32.totalorder %s18_s23, 4   ;;  %s1250_s19 = smov %s944_s20 }
 0x1b5   : > { %s1251_s20 = smov %s1042_s6  ;;  %s1252_s21 = smov %s952_s22 }
 0x1b6   : > { %s1253_s22 = smov %s1255_s26  ;;  %17 = sbr.rel (!%p15_p10) target bundleno = 4 (0x4), region = 83 }
 0x1bb   :  { %661 = vsyncpa [#allocation4], 1 }
 0x1bc   :  { %663 = vsyncpa [#allocation4 + $0x1], 1 }

</bundles_post_ra>
